<compile_context>
chip_gen: v6e
topology: v6e:2x2x1
jax: 0.10.0
libtpu: 0.0.40
codegen_flags: <defaults>
</compile_context>

<pallas_src>
import jax
import jax.numpy as jnp
from jax.experimental import pallas as pl
from jax.experimental.pallas import tpu as pltpu

LN_EPS = 1e-5          # nn.LayerNorm default eps
N_BLOCKS = 8           # AbbreviatedMixer.n_blocks / len(model.mixerblocks)


def _layer_norm(v, gamma, beta):
    # nn.LayerNorm over the embedding dim (biased variance, eps inside rsqrt).
    mu = jnp.mean(v, axis=-1, keepdims=True)
    var = jnp.mean((v - mu) ** 2, axis=-1, keepdims=True)
    return (v - mu) * jax.lax.rsqrt(var + LN_EPS) * gamma + beta


def fused_mixer_kernel(x_ref, wt_ref, bt_ref, g1_ref, be1_ref,
                       w1_ref, b1_ref, w2_ref, b2_ref, g2_ref, be2_ref,
                       o_ref):
    n = pl.program_id(1)                       # block index (inner, "arbitrary")

    # Seed the resident activation (the output block, whose block index is
    # constant across n) from the input exactly once per batch element.
    @pl.when(n == 0)
    def _():
        o_ref[...] = x_ref[...]

    x = o_ref[0]                               # (S, D) f32, resident in VMEM

    # ---- token mixing: LN over D -> (S,S) 1x1-conv-as-matmul -> residual ----
    y = _layer_norm(x, g1_ref[n], be1_ref[n])
    mixed = jnp.dot(wt_ref[n], y.astype(jnp.bfloat16),
                    preferred_element_type=jnp.float32)         # (S, D)
    x = mixed + bt_ref[n] + x                  # bt: (S,1) per-token conv bias

    # ---- channel mixing: LN over D -> Linear(D,H) -> GELU -> Linear(H,D) ----
    y = _layer_norm(x, g2_ref[n], be2_ref[n])
    h = jnp.dot(y.astype(jnp.bfloat16), w1_ref[n],
                preferred_element_type=jnp.float32) + b1_ref[n]
    h = jax.nn.gelu(h, approximate=True)       # tanh GELU -> EUP, frees VALU slots
    ff = jnp.dot(h.astype(jnp.bfloat16), w2_ref[n],
                 preferred_element_type=jnp.float32) + b2_ref[n]
    x = x + ff

    o_ref[0] = x                               # written back to HBM after n==N-1


def abbreviated_mixer_forward(x, stacked):
    """Run the full 8-block mixer stack in a single pallas_call."""
    B, S, D = x.shape
    N = stacked["w_tok"].shape[0]

    # Activation / output: one batch element per grid step; resident across the
    # inner block axis because its block index only depends on b.
    act_spec = pl.BlockSpec((1, S, D), lambda b, n: (b, 0, 0))

    # Fully VMEM-resident stacked parameter: full-extent block + constant index
    # map -> DMA'd once for the whole kernel, never re-streamed from HBM.
    def resident(arr):
        zeros = (0,) * arr.ndim
        return pl.BlockSpec(arr.shape, lambda b, n: zeros)

    return pl.pallas_call(
        fused_mixer_kernel,
        out_shape=jax.ShapeDtypeStruct((B, S, D), jnp.float32),
        grid=(B, N),
        in_specs=[
            act_spec,                          # x
            resident(stacked["w_tok"]),        # (N, S, S) bf16
            resident(stacked["b_tok"]),        # (N, S, 1)
            resident(stacked["ln1_g"]),        # (N, 1, D)
            resident(stacked["ln1_b"]),        # (N, 1, D)
            resident(stacked["w1"]),           # (N, D, H) bf16
            resident(stacked["b1"]),           # (N, 1, H)
            resident(stacked["w2"]),           # (N, H, D) bf16
            resident(stacked["b2"]),           # (N, 1, D)
            resident(stacked["ln2_g"]),        # (N, 1, D)
            resident(stacked["ln2_b"]),        # (N, 1, D)
        ],
        out_specs=act_spec,
        compiler_params=pltpu.CompilerParams(
            dimension_semantics=("parallel", "arbitrary"),
            vmem_limit_bytes=48 * 1024 * 1024,   # <64 MiB/TC (v7x), > default on v5e/v6e
        ),
    )(x, stacked["w_tok"], stacked["b_tok"], stacked["ln1_g"], stacked["ln1_b"],
      stacked["w1"], stacked["b1"], stacked["w2"], stacked["b2"],
      stacked["ln2_g"], stacked["ln2_b"])


def init_block_params(key, seq, dim, hidden):
    ks = jax.random.split(key, 6)
    scale = 0.02
    return {
        "w_tok": scale * jax.random.normal(ks[0], (seq, seq), jnp.float32),
        "b_tok": scale * jax.random.normal(ks[1], (seq, 1), jnp.float32),
        "ln1_g": jnp.ones((1, dim), jnp.float32),
        "ln1_b": jnp.zeros((1, dim), jnp.float32),
        "w1": scale * jax.random.normal(ks[2], (dim, hidden), jnp.float32),
        "b1": scale * jax.random.normal(ks[3], (1, hidden), jnp.float32),
        "w2": scale * jax.random.normal(ks[4], (hidden, dim), jnp.float32),
        "b2": scale * jax.random.normal(ks[5], (1, dim), jnp.float32),
        "ln2_g": jnp.ones((1, dim), jnp.float32),
        "ln2_b": jnp.zeros((1, dim), jnp.float32),
    }


def stack_block_params(block_params):
    # Stack per-block params along a leading N_BLOCKS axis; matmul weights bf16.
    stacked = {k: jnp.stack([p[k] for p in block_params]) for k in block_params[0]}
    for k in ("w_tok", "w1", "w2"):
        stacked[k] = stacked[k].astype(jnp.bfloat16)
    return stacked


def mixer_forward_ref(x, stacked):
    # Pure-JAX reference using the same bf16 weights / f32 accumulation / tanh GELU.
    N = stacked["w_tok"].shape[0]
    for i in range(N):
        p = {k: v[i] for k, v in stacked.items()}
        y = _layer_norm(x, p["ln1_g"], p["ln1_b"])
        mixed = jnp.einsum("ts,bsd->btd", p["w_tok"], y.astype(jnp.bfloat16),
                           preferred_element_type=jnp.float32)
        x = mixed + p["b_tok"] + x
        y = _layer_norm(x, p["ln2_g"], p["ln2_b"])
        h = jnp.einsum("bsd,dh->bsh", y.astype(jnp.bfloat16), p["w1"],
                       preferred_element_type=jnp.float32) + p["b1"]
        h = jax.nn.gelu(h, approximate=True)
        x = x + (jnp.einsum("bsh,hd->bsd", h.astype(jnp.bfloat16), p["w2"],
                            preferred_element_type=jnp.float32) + p["b2"])
    return x


if __name__ == "__main__":
    B, S, D = 4, 8, 32          # batch, sequence length, embedding dim
    H = 4 * D                   # FF expansion

    key = jax.random.PRNGKey(0)
    kx, kp = jax.random.split(key)
    x = jax.random.normal(kx, (B, S, D), jnp.float32)

    block_keys = jax.random.split(kp, N_BLOCKS)
    block_params = [init_block_params(k, S, D, H) for k in block_keys]
    stacked = stack_block_params(block_params)

    out = abbreviated_mixer_forward(x, stacked)
    jax.block_until_ready(out)
    assert out.shape == (B, S, D) and out.dtype == jnp.float32

    ref = mixer_forward_ref(x, stacked)
    max_err = float(jnp.max(jnp.abs(out - ref)))
    assert max_err < 5e-2, f"mismatch vs reference: max abs err {max_err}"
    print("KERNEL_OK")
</pallas_src>

<mosaic_0001>
module attributes {stable_mosaic.version = 11 : i64} {
  func.func @fused_mixer_kernel(%arg0: i32, %arg1: i32, %arg2: memref<1x8x32xf32, #tpu.memory_space<vmem>>, %arg3: memref<8x8x8xbf16, #tpu.memory_space<vmem>>, %arg4: memref<8x8x1xf32, #tpu.memory_space<vmem>>, %arg5: memref<8x1x32xf32, #tpu.memory_space<vmem>>, %arg6: memref<8x1x32xf32, #tpu.memory_space<vmem>>, %arg7: memref<8x32x128xbf16, #tpu.memory_space<vmem>>, %arg8: memref<8x1x128xf32, #tpu.memory_space<vmem>>, %arg9: memref<8x128x32xbf16, #tpu.memory_space<vmem>>, %arg10: memref<8x1x32xf32, #tpu.memory_space<vmem>>, %arg11: memref<8x1x32xf32, #tpu.memory_space<vmem>>, %arg12: memref<8x1x32xf32, #tpu.memory_space<vmem>>, %arg13: memref<1x8x32xf32, #tpu.memory_space<vmem>>) attributes {dimension_semantics = [#tpu.dimension_semantics<parallel>, #tpu.dimension_semantics<arbitrary>], iteration_bounds = array<i64: 4, 8>, scalar_prefetch = 0 : i64, scratch_operands = 0 : i64, tpu.core_type = #tpu.core_type<tc>, window_params = [{transform_indices = @transform_0, window_bounds = array<i64: 1, 8, 32>}, {pipeline_mode = #tpu.pipeline_mode<synchronous>, transform_indices = @transform_1, window_bounds = array<i64: 8, 8, 8>}, {pipeline_mode = #tpu.pipeline_mode<synchronous>, transform_indices = @transform_2, window_bounds = array<i64: 8, 8, 1>}, {pipeline_mode = #tpu.pipeline_mode<synchronous>, transform_indices = @transform_3, window_bounds = array<i64: 8, 1, 32>}, {pipeline_mode = #tpu.pipeline_mode<synchronous>, transform_indices = @transform_4, window_bounds = array<i64: 8, 1, 32>}, {pipeline_mode = #tpu.pipeline_mode<synchronous>, transform_indices = @transform_5, window_bounds = array<i64: 8, 32, 128>}, {pipeline_mode = #tpu.pipeline_mode<synchronous>, transform_indices = @transform_6, window_bounds = array<i64: 8, 1, 128>}, {pipeline_mode = #tpu.pipeline_mode<synchronous>, transform_indices = @transform_7, window_bounds = array<i64: 8, 128, 32>}, {pipeline_mode = #tpu.pipeline_mode<synchronous>, transform_indices = @transform_8, window_bounds = array<i64: 8, 1, 32>}, {pipeline_mode = #tpu.pipeline_mode<synchronous>, transform_indices = @transform_9, window_bounds = array<i64: 8, 1, 32>}, {pipeline_mode = #tpu.pipeline_mode<synchronous>, transform_indices = @transform_10, window_bounds = array<i64: 8, 1, 32>}, {transform_indices = @transform_11, window_bounds = array<i64: 1, 8, 32>}]} {
    %c0_i32 = arith.constant 0 : i32
    %0 = arith.cmpi eq, %arg1, %c0_i32 : i32
    %1 = arith.extui %0 : i1 to i32
    %c0_i32_0 = arith.constant 0 : i32
    %2 = arith.cmpi ne, %1, %c0_i32_0 : i32
    scf.if %2 {
      %c0_42 = arith.constant 0 : index
      %c0_43 = arith.constant 0 : index
      %c0_44 = arith.constant 0 : index
      %109 = vector.load %arg2[%c0_42, %c0_43, %c0_44] : memref<1x8x32xf32, #tpu.memory_space<vmem>>, vector<1x8x32xf32>
      %c0_45 = arith.constant 0 : index
      %c0_46 = arith.constant 0 : index
      %c0_47 = arith.constant 0 : index
      %110 = vector.load %arg13[%c0_45, %c0_46, %c0_47] : memref<1x8x32xf32, #tpu.memory_space<vmem>>, vector<1x8x32xf32>
      tpu.vector_store %arg13[%c0_45, %c0_46, %c0_47], %109 {strides = array<i32>} : memref<1x8x32xf32, #tpu.memory_space<vmem>>, vector<1x8x32xf32>,
    } else {
    }
    %c0 = arith.constant 0 : index
    %c0_1 = arith.constant 0 : index
    %c0_2 = arith.constant 0 : index
    %3 = vector.load %arg13[%c0, %c0_1, %c0_2] : memref<1x8x32xf32, #tpu.memory_space<vmem>>, vector<1x8x32xf32>
    %4 = vector.shape_cast %3 : vector<1x8x32xf32> to vector<8x32xf32>
    %5 = arith.index_cast %arg1 : i32 to index
    %c0_3 = arith.constant 0 : index
    %c0_4 = arith.constant 0 : index
    %6 = vector.load %arg5[%5, %c0_3, %c0_4] : memref<8x1x32xf32, #tpu.memory_space<vmem>>, vector<1x1x32xf32>
    %7 = vector.shape_cast %6 : vector<1x1x32xf32> to vector<1x32xf32>
    %8 = arith.index_cast %arg1 : i32 to index
    %c0_5 = arith.constant 0 : index
    %c0_6 = arith.constant 0 : index
    %9 = vector.load %arg6[%8, %c0_5, %c0_6] : memref<8x1x32xf32, #tpu.memory_space<vmem>>, vector<1x1x32xf32>
    %10 = vector.shape_cast %9 : vector<1x1x32xf32> to vector<1x32xf32>
    %cst = arith.constant dense<0.000000e+00> : vector<8xf32>
    %11 = vector.multi_reduction <add>, %4, %cst [1] : vector<8x32xf32> to vector<8xf32>
    %12 = vector.shape_cast %11 : vector<8xf32> to vector<8x1xf32>
    %cst_7 = arith.constant 3.200000e+01 : f32
    %13 = vector.broadcast %cst_7 : f32 to vector<8x1xf32>
    %14 = arith.divf %12, %13 : vector<8x1xf32>
    %15 = vector.broadcast %14 : vector<8x1xf32> to vector<8x32xf32>
    %16 = arith.subf %4, %15 : vector<8x32xf32>
    %17 = arith.mulf %16, %16 : vector<8x32xf32>
    %cst_8 = arith.constant dense<0.000000e+00> : vector<8xf32>
    %18 = vector.multi_reduction <add>, %17, %cst_8 [1] : vector<8x32xf32> to vector<8xf32>
    %19 = vector.shape_cast %18 : vector<8xf32> to vector<8x1xf32>
    %cst_9 = arith.constant 3.200000e+01 : f32
    %20 = vector.broadcast %cst_9 : f32 to vector<8x1xf32>
    %21 = arith.divf %19, %20 : vector<8x1xf32>
    %22 = vector.broadcast %14 : vector<8x1xf32> to vector<8x32xf32>
    %23 = arith.subf %4, %22 : vector<8x32xf32>
    %cst_10 = arith.constant 9.99999974E-6 : f32
    %24 = vector.broadcast %cst_10 : f32 to vector<8x1xf32>
    %25 = arith.addf %21, %24 : vector<8x1xf32>
    %26 = math.rsqrt %25 : vector<8x1xf32>
    %27 = vector.broadcast %26 : vector<8x1xf32> to vector<8x32xf32>
    %28 = arith.mulf %23, %27 : vector<8x32xf32>
    %29 = vector.broadcast %7 : vector<1x32xf32> to vector<8x32xf32>
    %30 = arith.mulf %28, %29 : vector<8x32xf32>
    %31 = vector.broadcast %10 : vector<1x32xf32> to vector<8x32xf32>
    %32 = arith.addf %30, %31 : vector<8x32xf32>
    %33 = arith.index_cast %arg1 : i32 to index
    %c0_11 = arith.constant 0 : index
    %c0_12 = arith.constant 0 : index
    %34 = vector.load %arg3[%33, %c0_11, %c0_12] : memref<8x8x8xbf16, #tpu.memory_space<vmem>>, vector<1x8x8xbf16>
    %35 = vector.shape_cast %34 : vector<1x8x8xbf16> to vector<8x8xbf16>
    %36 = arith.truncf %32 : vector<8x32xf32> to vector<8x32xbf16>
    %cst_13 = arith.constant dense<0.000000e+00> : vector<8x32xf32>
    %37 = tpu.matmul %35, %36, %cst_13 {dimension_numbers = #tpu.dot_dimension_numbers<[1], [0], [0], [1], [0, 0, 1, 1], [], []>} : vector<8x8xbf16>, vector<8x32xbf16>, vector<8x32xf32> -> vector<8x32xf32>
    %38 = arith.index_cast %arg1 : i32 to index
    %c0_14 = arith.constant 0 : index
    %c0_15 = arith.constant 0 : index
    %39 = vector.load %arg4[%38, %c0_14, %c0_15] : memref<8x8x1xf32, #tpu.memory_space<vmem>>, vector<1x8x1xf32>
    %40 = vector.shape_cast %39 : vector<1x8x1xf32> to vector<8x1xf32>
    %41 = vector.broadcast %40 : vector<8x1xf32> to vector<8x32xf32>
    %42 = arith.addf %37, %41 : vector<8x32xf32>
    %43 = arith.addf %42, %4 : vector<8x32xf32>
    %44 = arith.index_cast %arg1 : i32 to index
    %c0_16 = arith.constant 0 : index
    %c0_17 = arith.constant 0 : index
    %45 = vector.load %arg11[%44, %c0_16, %c0_17] : memref<8x1x32xf32, #tpu.memory_space<vmem>>, vector<1x1x32xf32>
    %46 = vector.shape_cast %45 : vector<1x1x32xf32> to vector<1x32xf32>
    %47 = arith.index_cast %arg1 : i32 to index
    %c0_18 = arith.constant 0 : index
    %c0_19 = arith.constant 0 : index
    %48 = vector.load %arg12[%47, %c0_18, %c0_19] : memref<8x1x32xf32, #tpu.memory_space<vmem>>, vector<1x1x32xf32>
    %49 = vector.shape_cast %48 : vector<1x1x32xf32> to vector<1x32xf32>
    %cst_20 = arith.constant dense<0.000000e+00> : vector<8xf32>
    %50 = vector.multi_reduction <add>, %43, %cst_20 [1] : vector<8x32xf32> to vector<8xf32>
    %51 = vector.shape_cast %50 : vector<8xf32> to vector<8x1xf32>
    %cst_21 = arith.constant 3.200000e+01 : f32
    %52 = vector.broadcast %cst_21 : f32 to vector<8x1xf32>
    %53 = arith.divf %51, %52 : vector<8x1xf32>
    %54 = vector.broadcast %53 : vector<8x1xf32> to vector<8x32xf32>
    %55 = arith.subf %43, %54 : vector<8x32xf32>
    %56 = arith.mulf %55, %55 : vector<8x32xf32>
    %cst_22 = arith.constant dense<0.000000e+00> : vector<8xf32>
    %57 = vector.multi_reduction <add>, %56, %cst_22 [1] : vector<8x32xf32> to vector<8xf32>
    %58 = vector.shape_cast %57 : vector<8xf32> to vector<8x1xf32>
    %cst_23 = arith.constant 3.200000e+01 : f32
    %59 = vector.broadcast %cst_23 : f32 to vector<8x1xf32>
    %60 = arith.divf %58, %59 : vector<8x1xf32>
    %61 = vector.broadcast %53 : vector<8x1xf32> to vector<8x32xf32>
    %62 = arith.subf %43, %61 : vector<8x32xf32>
    %cst_24 = arith.constant 9.99999974E-6 : f32
    %63 = vector.broadcast %cst_24 : f32 to vector<8x1xf32>
    %64 = arith.addf %60, %63 : vector<8x1xf32>
    %65 = math.rsqrt %64 : vector<8x1xf32>
    %66 = vector.broadcast %65 : vector<8x1xf32> to vector<8x32xf32>
    %67 = arith.mulf %62, %66 : vector<8x32xf32>
    %68 = vector.broadcast %46 : vector<1x32xf32> to vector<8x32xf32>
    %69 = arith.mulf %67, %68 : vector<8x32xf32>
    %70 = vector.broadcast %49 : vector<1x32xf32> to vector<8x32xf32>
    %71 = arith.addf %69, %70 : vector<8x32xf32>
    %72 = arith.truncf %71 : vector<8x32xf32> to vector<8x32xbf16>
    %73 = arith.index_cast %arg1 : i32 to index
    %c0_25 = arith.constant 0 : index
    %c0_26 = arith.constant 0 : index
    %74 = vector.load %arg7[%73, %c0_25, %c0_26] : memref<8x32x128xbf16, #tpu.memory_space<vmem>>, vector<1x32x128xbf16>
    %75 = vector.shape_cast %74 : vector<1x32x128xbf16> to vector<32x128xbf16>
    %cst_27 = arith.constant dense<0.000000e+00> : vector<8x128xf32>
    %76 = tpu.matmul %72, %75, %cst_27 {dimension_numbers = #tpu.dot_dimension_numbers<[1], [0], [0], [1], [0, 0, 1, 1], [], []>} : vector<8x32xbf16>, vector<32x128xbf16>, vector<8x128xf32> -> vector<8x128xf32>
    %77 = arith.index_cast %arg1 : i32 to index
    %c0_28 = arith.constant 0 : index
    %c0_29 = arith.constant 0 : index
    %78 = vector.load %arg8[%77, %c0_28, %c0_29] : memref<8x1x128xf32, #tpu.memory_space<vmem>>, vector<1x1x128xf32>
    %79 = vector.shape_cast %78 : vector<1x1x128xf32> to vector<1x128xf32>
    %80 = vector.broadcast %79 : vector<1x128xf32> to vector<8x128xf32>
    %81 = arith.addf %76, %80 : vector<8x128xf32>
    %82 = arith.mulf %81, %81 : vector<8x128xf32>
    %83 = arith.mulf %81, %82 : vector<8x128xf32>
    %cst_30 = arith.constant 4.471500e-02 : f32
    %84 = vector.broadcast %cst_30 : f32 to vector<8x128xf32>
    %85 = arith.mulf %84, %83 : vector<8x128xf32>
    %86 = arith.addf %81, %85 : vector<8x128xf32>
    %cst_31 = arith.constant 0.797884583 : f32
    %87 = vector.broadcast %cst_31 : f32 to vector<8x128xf32>
    %88 = arith.mulf %87, %86 : vector<8x128xf32>
    %89 = math.tanh %88 : vector<8x128xf32>
    %cst_32 = arith.constant 1.000000e+00 : f32
    %90 = vector.broadcast %cst_32 : f32 to vector<8x128xf32>
    %91 = arith.addf %90, %89 : vector<8x128xf32>
    %cst_33 = arith.constant 5.000000e-01 : f32
    %92 = vector.broadcast %cst_33 : f32 to vector<8x128xf32>
    %93 = arith.mulf %92, %91 : vector<8x128xf32>
    %94 = arith.mulf %81, %93 : vector<8x128xf32>
    %95 = arith.truncf %94 : vector<8x128xf32> to vector<8x128xbf16>
    %96 = arith.index_cast %arg1 : i32 to index
    %c0_34 = arith.constant 0 : index
    %c0_35 = arith.constant 0 : index
    %97 = vector.load %arg9[%96, %c0_34, %c0_35] : memref<8x128x32xbf16, #tpu.memory_space<vmem>>, vector<1x128x32xbf16>
    %98 = vector.shape_cast %97 : vector<1x128x32xbf16> to vector<128x32xbf16>
    %cst_36 = arith.constant dense<0.000000e+00> : vector<8x32xf32>
    %99 = tpu.matmul %95, %98, %cst_36 {dimension_numbers = #tpu.dot_dimension_numbers<[1], [0], [0], [1], [0, 0, 1, 1], [], []>} : vector<8x128xbf16>, vector<128x32xbf16>, vector<8x32xf32> -> vector<8x32xf32>
    %100 = arith.index_cast %arg1 : i32 to index
    %c0_37 = arith.constant 0 : index
    %c0_38 = arith.constant 0 : index
    %101 = vector.load %arg10[%100, %c0_37, %c0_38] : memref<8x1x32xf32, #tpu.memory_space<vmem>>, vector<1x1x32xf32>
    %102 = vector.shape_cast %101 : vector<1x1x32xf32> to vector<1x32xf32>
    %103 = vector.broadcast %102 : vector<1x32xf32> to vector<8x32xf32>
    %104 = arith.addf %99, %103 : vector<8x32xf32>
    %105 = arith.addf %43, %104 : vector<8x32xf32>
    %c0_39 = arith.constant 0 : index
    %c0_40 = arith.constant 0 : index
    %c0_41 = arith.constant 0 : index
    %106 = vector.load %arg13[%c0_39, %c0_40, %c0_41] : memref<1x8x32xf32, #tpu.memory_space<vmem>>, vector<1x8x32xf32>
    %107 = vector.shape_cast %106 : vector<1x8x32xf32> to vector<8x32xf32>
    %108 = vector.shape_cast %105 : vector<8x32xf32> to vector<1x8x32xf32>
    tpu.vector_store %arg13[%c0_39, %c0_40, %c0_41], %108 {strides = array<i32>} : memref<1x8x32xf32, #tpu.memory_space<vmem>>, vector<1x8x32xf32>,
    return
  }
  func.func @transform_0(%arg0: i32, %arg1: i32) -> (i32, i32, i32) {
    %c0_i32 = arith.constant 0 : i32
    %c0_i32_0 = arith.constant 0 : i32
    %c0_i32_1 = arith.constant 0 : i32
    return %arg0, %c0_i32, %c0_i32_0 : i32, i32, i32
  }
  func.func @transform_1(%arg0: i32, %arg1: i32) -> (i32, i32, i32) {
    %c0_i32 = arith.constant 0 : i32
    %c0_i32_0 = arith.constant 0 : i32
    %c0_i32_1 = arith.constant 0 : i32
    %c0_i32_2 = arith.constant 0 : i32
    return %c0_i32, %c0_i32_0, %c0_i32_1 : i32, i32, i32
  }
  func.func @transform_2(%arg0: i32, %arg1: i32) -> (i32, i32, i32) {
    %c0_i32 = arith.constant 0 : i32
    %c0_i32_0 = arith.constant 0 : i32
    %c0_i32_1 = arith.constant 0 : i32
    %c0_i32_2 = arith.constant 0 : i32
    return %c0_i32, %c0_i32_0, %c0_i32_1 : i32, i32, i32
  }
  func.func @transform_3(%arg0: i32, %arg1: i32) -> (i32, i32, i32) {
    %c0_i32 = arith.constant 0 : i32
    %c0_i32_0 = arith.constant 0 : i32
    %c0_i32_1 = arith.constant 0 : i32
    %c0_i32_2 = arith.constant 0 : i32
    return %c0_i32, %c0_i32_0, %c0_i32_1 : i32, i32, i32
  }
  func.func @transform_4(%arg0: i32, %arg1: i32) -> (i32, i32, i32) {
    %c0_i32 = arith.constant 0 : i32
    %c0_i32_0 = arith.constant 0 : i32
    %c0_i32_1 = arith.constant 0 : i32
    %c0_i32_2 = arith.constant 0 : i32
    return %c0_i32, %c0_i32_0, %c0_i32_1 : i32, i32, i32
  }
  func.func @transform_5(%arg0: i32, %arg1: i32) -> (i32, i32, i32) {
    %c0_i32 = arith.constant 0 : i32
    %c0_i32_0 = arith.constant 0 : i32
    %c0_i32_1 = arith.constant 0 : i32
    %c0_i32_2 = arith.constant 0 : i32
    return %c0_i32, %c0_i32_0, %c0_i32_1 : i32, i32, i32
  }
  func.func @transform_6(%arg0: i32, %arg1: i32) -> (i32, i32, i32) {
    %c0_i32 = arith.constant 0 : i32
    %c0_i32_0 = arith.constant 0 : i32
    %c0_i32_1 = arith.constant 0 : i32
    %c0_i32_2 = arith.constant 0 : i32
    return %c0_i32, %c0_i32_0, %c0_i32_1 : i32, i32, i32
  }
  func.func @transform_7(%arg0: i32, %arg1: i32) -> (i32, i32, i32) {
    %c0_i32 = arith.constant 0 : i32
    %c0_i32_0 = arith.constant 0 : i32
    %c0_i32_1 = arith.constant 0 : i32
    %c0_i32_2 = arith.constant 0 : i32
    return %c0_i32, %c0_i32_0, %c0_i32_1 : i32, i32, i32
  }
  func.func @transform_8(%arg0: i32, %arg1: i32) -> (i32, i32, i32) {
    %c0_i32 = arith.constant 0 : i32
    %c0_i32_0 = arith.constant 0 : i32
    %c0_i32_1 = arith.constant 0 : i32
    %c0_i32_2 = arith.constant 0 : i32
    return %c0_i32, %c0_i32_0, %c0_i32_1 : i32, i32, i32
  }
  func.func @transform_9(%arg0: i32, %arg1: i32) -> (i32, i32, i32) {
    %c0_i32 = arith.constant 0 : i32
    %c0_i32_0 = arith.constant 0 : i32
    %c0_i32_1 = arith.constant 0 : i32
    %c0_i32_2 = arith.constant 0 : i32
    return %c0_i32, %c0_i32_0, %c0_i32_1 : i32, i32, i32
  }
  func.func @transform_10(%arg0: i32, %arg1: i32) -> (i32, i32, i32) {
    %c0_i32 = arith.constant 0 : i32
    %c0_i32_0 = arith.constant 0 : i32
    %c0_i32_1 = arith.constant 0 : i32
    %c0_i32_2 = arith.constant 0 : i32
    return %c0_i32, %c0_i32_0, %c0_i32_1 : i32, i32, i32
  }
  func.func @transform_11(%arg0: i32, %arg1: i32) -> (i32, i32, i32) {
    %c0_i32 = arith.constant 0 : i32
    %c0_i32_0 = arith.constant 0 : i32
    %c0_i32_1 = arith.constant 0 : i32
    return %arg0, %c0_i32, %c0_i32_0 : i32, i32, i32
  }
}

</mosaic_0001>

<bundles_post_ra>
// kernel: tpu_custom_call.1
= control target key start
LH: loop header
LB: loop body
LE: loop exit
PB: predicated region body
PF: predicated region fallthrough
CT: control target
= control target key end

     0   :  { %s1370_s0 = inlined_call_operand.vmem [shape: f32[4,8,32], index: 0, kind: input, shape index: {}]   ;;  %s1371_s1 = inlined_call_operand.vmem [shape: bf16[8,8,8], index: 1, kind: input, shape index: {}]   ;;  %s1372_s2 = inlined_call_operand.vmem [shape: f32[8,8,1], index: 2, kind: input, shape index: {}]   ;;  %s1373_s3 = inlined_call_operand.vmem [shape: f32[8,1,32], index: 3, kind: input, shape index: {}]   ;;  %s1374_s4 = inlined_call_operand.vmem [shape: f32[8,1,32], index: 4, kind: input, shape index: {}]   ;;  %s1375_s5 = inlined_call_operand.vmem [shape: bf16[8,32,128], index: 5, kind: input, shape index: {}]   ;;  %s1376_s6 = inlined_call_operand.vmem [shape: f32[8,1,128], index: 6, kind: input, shape index: {}]   ;;  %s1377_s7 = inlined_call_operand.vmem [shape: bf16[8,128,32], index: 7, kind: input, shape index: {}]   ;;  %s1378_s8 = inlined_call_operand.vmem [shape: f32[8,1,32], index: 8, kind: input, shape index: {}]   ;;  %s1379_s9 = inlined_call_operand.vmem [shape: f32[8,1,32], index: 9, kind: input, shape index: {}]   ;;  %s1380_s10 = inlined_call_operand.vmem [shape: f32[8,1,32], index: 10, kind: input, shape index: {}]   ;;  %s1381_s11 = inlined_call_operand.hbm [shape: f32[4,8,32], index: 11, kind: output, shape index: {}]  }
   0x1   :  { %1386 = sst [smem:[#allocation9_spill]] %s1370_s0 }
   0x2   :  { %16 = vsyncpa [#allocation3], 0 }
   0x3   :  { %18 = vsyncpa [#allocation3 + $0x1], 0  ;;  %s1160_s17 = smov 0   ;;  %s1162_s18 = smov 0  }
   0x4   :  { %s1164_s19 = smov 0   ;;  %s1166_s20 = smov 0  }
   0x5   :  { %s1168_s21 = smov 0   ;;  %s1170_s22 = smov 0  }
   0x6   :  { %s1172_s23 = smov 0   ;;  %s1174_s24 = smov 0  }
   0x7 LB: > { %1387 = sst [smem:[#allocation5_spill]] %s1086_s22  ;;  %s824_s25 = sadd.s32 4294967295, %s1094_s24   ;;  %s1094_s24 = sphi %s1174_s24, %s24_s24   ;;  %s1090_s23 = sphi %s1172_s23, %s1403_s23   ;;  %s1086_s22 = sphi %s1170_s22, %s1397_s22   ;;  %s1082_s21 = sphi %s1168_s21, %s1402_s21   ;;  %s1078_s20 = sphi %s1166_s20, %s1396_s20   ;;  %s1074_s19 = sphi %s1164_s19, %s1401_s19   ;;  %s1070_s18 = sphi %s1162_s18, %s1400_s18   ;;  %s1066_s17 = sphi %s1160_s17, %s1399_s17  }
   0x8   : > { %s825_s26 = sadd.s32 4294967294, %s1094_s24   ;;  %s33_s27 = sadd.s32 1, %s1086_s22 }
   0x9   : > { %p34_p0 = scmp.ge.s32.totalorder %s33_s27, 8  ;;  %s36_s28 = sadd.s32 1, %s1090_s23 }
   0xa   : > { %p289_p1 = scmp.ne.s32.totalorder %s1074_s19, %s1070_s18  ;;  %p290_p2 = scmp.eq.s32.totalorder %s824_s25, 31 }
   0xb   : > { %s1405_s27 = smov (%p34_p0, %s33_s27), 0  ;;  %s1407_s28 = smov (!%p34_p0, %s36_s28), %s1090_s23 }
   0xc   : > { %1388 = sst [smem:[#allocation6_spill]] %s1405_s27  ;;  %p1209_p3 = por %p290_p2, %p289_p1 }
   0xd   : > { %p295_p4 = scmp.ne.s32.totalorder %s1070_s18, %s1066_s17  ;;  %p38_p5 = scmp.ge.s32.totalorder %s1407_s28, 4 }
   0xe   : > { %p296_p6 = scmp.eq.s32.totalorder %s825_s26, 31  ;;  %p828_p7 = scmp.ge.s32.totalorder %s1094_s24, 1 }
   0xf   : > { %p351_p8 = scmp.lt.s32.totalorder %s1094_s24, 33  ;;  %s1409_s28 = smov (%p38_p5, %s1407_s28), 0 }
  0x10   : > { %1390 = sst [smem:[#allocation7_spill]] %s1409_s28  ;;  %p1219_p9 = por %p296_p6, %p295_p4 }
  0x11   : > { %p352_p10 = pnand %p828_p7, %p351_p8  ;;  %s276_s12 = ssub.s32 %s1090_s23, %s1409_s28 }
  0x12   : > { %s1391_s30 = scalar_select %p1219_p9, 1, 0 }
  0x13   : > { %s279_s13 = sadd.s32 1, %s1074_s19  ;;  %p277_p11 = scmp.eq.s32.totalorder %s276_s12, 0 }
  0x14   : > { %1392 = sst [smem:[#allocation8_spill]] %s1391_s30  ;;  %355 = sbr.rel (%p352_p10) target bundleno = 1299 (0x513), region = 64 }
  0x15   : > { %s1227_s14 = scalar_select %p277_p11, %s1074_s19, %s279_s13  }
  0x16   : > { %s1385_s15 = sand.u32 (!%p352_p10), 1, %s1070_s18   ;;  %p390_p12 = scmp.lt.s32.totalorder (!%p352_p10), %s1082_s21, 3 }
  0x17   : > { %s829_s16 = sshll.u32 (!%p352_p10), %s1385_s15, 3  ;;  %s1393_s0 = sld [smem:[#allocation9_spill]] (!%p352_p10) }
  0x18   : > { %s1237_s28 = scalar_lea.vmem (!%p352_p10), [#allocation2], %s829_s16  ;;  %p831_p13 = scmp.ne.s32.totalorder (!%p352_p10), %s1078_s20, 0 }
  0x19   : > { %s391_s25 = scalar_select %p390_p12, %s1082_s21, 3 }
  0x1a   : > { %398 = sbr.rel (%p831_p13) target bundleno = 33 (0x21), region = 68 }
  0x1b   : > { %s830_s26 = sshll.u32 %s391_s25, 3 }
  0x1d   : > { %s393_s30 = scalar_lea.vmem %s1393_s0, %s830_s26 }
  0x1f   : > { %v399_v0 = vld [vmem:[%s393_s30] sm:$0xff]  ;;  %vm400_vm0 = vcmask 261120  }
  0x20   : > { %401 = vst.msk [vmem:[%s1237_s28] sm:$0xff] %vm400_vm0, %v399_v0 }
  0x21 PF: > { %vm407_vm1 = vcmask 261120   ;;  %v1096_v8 = vmov 0.0   ;;  %vm1097_vm2 = vmmov 0   ;;  %s835_s22 = sshll.u32 %s1078_s20, 3  ;;  %v1098_v9 = vmov 0   ;;  %s403_s25 = scalar_lea.vmem %s1373_s3, %s1078_s20 }
  0x22   : > { %876 = vmatprep.subr.bf16.mxu1 %v1096_v8  ;;  %890 = vmatprep.subr.bf16.mxu0 %v1096_v8  ;;  %s441_s12 = scalar_lea.vmem %s1372_s2, %s835_s22  ;;  %s405_s0 = scalar_lea.vmem %s1374_s4, %s1078_s20  ;;  %v832_v15 = vld [vmem:[%s403_s25] ss:$0 sm:$0xff]  ;;  %vm452_vm3 = vcmask 1043456   ;;  %vm448_vm4 = vcmask 64512  }
  0x23   : > { %878 = vmatprep.mubr.msk.bf16.mxu1 %vm1097_vm2, %v1096_v8  ;;  %906 = vmatprep.mubr.msk.bf16.mxu0 %vm1097_vm2, %v1096_v8  ;;  %v442_v10 = vld [vmem:[%s441_s12] sm:$0xff]  ;;  %s834_s22 = sshll.u32 %s1078_s20, 2  ;;  %s740_s15 = sshll.u32 %s1237_s28, 4  ;;  %s1316_s15 = int_to_ptr.vmem [resolvable:$true] %s740_s15 }
  0x24   : > { %984 = vset.pattern.permute.xlu1 %v1098_v9  ;;  %985 = vset.pattern.permute.xlu0 %v1098_v9  ;;  %v833_v17 = vld [vmem:[%s405_s0] ss:$0 sm:$0xff]  ;;  %s437_s12 = scalar_lea.vmem %s1371_s1, %s834_s22  ;;  %s860_s0 = sshll.u32 %s1078_s20, 4 }
  0x25   : > { %445 = vperm.xlu1 %984, %v442_v10   ;;  %v438_v22 = vld [vmem:[%s437_s12] sm:$0xf]  ;;  %s531_s16 = scalar_lea.vmem %s1375_s5, %s860_s0  ;;  %s497_s22 = scalar_lea.vmem %s1379_s9, %s1078_s20 }
  0x26   : > { %v986_v36 = vld [vmem:[%s531_s16 + $0x8] sm:$0xff]   ;;  %v987_v37 = vld [vmem:[%s531_s16] sm:$0xff]   ;;  %s499_s12 = scalar_lea.vmem %s1380_s10, %s1078_s20  ;;  %s861_s0 = sshll.u32 %s1078_s20, 6 }
  0x27   : > { %v402_v1 = vld [vmem:[%s1237_s28] sm:$0xff]  ;;  %s611_s16 = scalar_lea.vmem %s1377_s7, %s861_s0  ;;  %s857_s0 = sshll.u32 %s1082_s21, 7 }
  0x28   : > { %v408_v2 = vsel %vm407_vm1, %v402_v1, 0.0  ;;  %v837_v42 = vld [vmem:[%s497_s22] ss:$0 sm:$0xff]  ;;  %v988_v48 = vld [vmem:[%s611_s16 + $0x38] sm:$0xff]   ;;  %v989_v49 = vld [vmem:[%s611_s16 + $0x30] sm:$0xff]   ;;  %s536_s22 = scalar_lea.vmem %s1376_s6, %s1078_s20  ;;  %s1314_s25 = scalar_lea.hbm %s1381_s11, %s857_s0 }
  0x29   : > { %409 = vadd.xlane.f32.xlu0 %v408_v2  ;;  %v838_v44 = vld [vmem:[%s499_s12] ss:$0 sm:$0xff]  ;;  %891 = vmatpush3.bf16.msra.mxu0 %v988_v48  ;;  %v990_v50 = vld [vmem:[%s611_s16 + $0x28] sm:$0xff]   ;;  %v992_v52 = vld [vmem:[%s611_s16 + $0x18] sm:$0xff]   ;;  %s628_s12 = scalar_lea.vmem %s1378_s8, %s1078_s20  ;;  %s1394_s20 = sand.u32 1, %s1070_s18  }
  0x2a   : > { %892 = vmatprep.subr.bf16.mxu0 %v1096_v8  ;;  %v991_v51 = vld [vmem:[%s611_s16 + $0x20] sm:$0xff]   ;;  %v993_v53 = vld [vmem:[%s611_s16 + $0x10] sm:$0xff]   ;;  %v994_v54 = vld [vmem:[%s611_s16 + $0x8] sm:$0xff]   ;;  %s727_s21 = scalar_lea.sflag [#allocation3], %s1394_s20  ;;  %s1002_s26 = scalar_lea.vmem %s1316_s15, 128 }
  0x2b   : > { %v995_v55 = vld [vmem:[%s611_s16] sm:$0xff]   ;;  %p1003_p0 = scmp.ne.s32.totalorder %s1316_s15, %s1002_s26 }
  0x2c   : > { %v841_v56 = vld [vmem:[%s536_s22] ss:$0 sm:$0xff]  ;;  %s1099_s22 = smov [#allocation2]  }
  0x2d   : > { %893 = vmatpush3.bf16.msra.mxu0 %v989_v49  ;;  %p1004_p1 = pnand %p1003_p0, %p1209_p3  ;;  %s1006_s27 = sshll.u32 %s1099_s22, 4  ;;  %s1007_s27 = int_to_ptr.vmem [resolvable:$false] %s1006_s27 }
  0x2e   : > { %894 = vmatprep.subr.bf16.mxu0 %v1096_v8  ;;  %s1008_s30 = scalar_lea.vmem %s1007_s27, 256  ;;  %p1009_p4 = scmp.lt.s32.totalorder %s1316_s15, %s1007_s27 }
  0x2f   : > { %p1005_p2 = pneg %p1004_p1  ;;  %p1010_p5 = scmp.lt.s32.totalorder %s1008_s30, %s1002_s26 }
  0x31   : > { %895 = vmatpush3.bf16.msra.mxu0 %v990_v50  ;;  %p1011_p6 = por %p1010_p5, %p1009_p4 }
  0x32   : > { %896 = vmatprep.subr.bf16.mxu0 %v1096_v8 }
  0x33   : > { %p1012_p7 = pnand %p1011_p6, %p1005_p2 }
  0x35   : > { %897 = vmatpush3.bf16.msra.mxu0 %v991_v51 }
  0x36   : > { %898 = vmatprep.subr.bf16.mxu0 %v1096_v8 }
  0x39   : > { %899 = vmatpush3.bf16.msra.mxu0 %v992_v52 }
  0x3a   : > { %900 = vmatprep.subr.bf16.mxu0 %v1096_v8 }
  0x3d   : > { %901 = vmatpush3.bf16.msra.mxu0 %v993_v53 }
  0x3e   : > { %902 = vmatprep.subr.bf16.mxu0 %v1096_v8 }
  0x41   : > { %903 = vmatpush3.bf16.msra.mxu0 %v994_v54 }
  0x42   : > { %904 = vmatprep.subr.bf16.mxu0 %v1096_v8 }
  0x45   : > { %905 = vmatpush3.bf16.msra.mxu0 %v995_v55 }
  0xa0   : > { %v446_v23 = vpop.permute.xlu1 %445 }
  0xb2   : > { %v410_v3 = vpop.xlane.xlu0 %409 }
  0xb3   : > { %v412_v4 = vmul.f32 0.03125, %v410_v3 }
  0xb5   : > { %v413_v5 = vsub.f32 %v402_v1, %v412_v4 }
  0xb7   : > { %v414_v6 = vmul.f32 %v413_v5, %v413_v5 }
  0xb9   : > { %v415_v7 = vsel %vm407_vm1, %v414_v6, 0.0 }
  0xba   : > { %416 = vadd.xlane.f32.xlu0 %v415_v7 }
 0x143   : > { %v417_v11 = vpop.xlane.xlu0 %416 }
 0x144   : > { %v418_v12 = vmul.f32 0.03125, %v417_v11 }
 0x146   : > { %v419_v13 = vadd.f32 1e-05, %v418_v12 }
 0x148   : > { %996 = vrsqrt.f32 %v419_v13 }
 0x155   : > { %v997_v14 = vpop.eup %996 }
 0x156   : > { %v421_v16 = vmul.f32 %v997_v14, %v413_v5 }
 0x158   : > { %v428_v18 = vmul.f32 %v832_v15, %v421_v16 }
 0x15a   : > { %v435_v19 = vadd.f32 %v833_v17, %v428_v18 }
 0x15c   : > { %v439_v20 = vpack.c.bf16 %v435_v19, %v435_v19 }
 0x15e   : > { %v454_v21 = vsel %vm452_vm3, %v439_v20, 0 }
 0x15f   : > { %877 = vmatpush3.bf16.msra.mxu1 %v454_v21 }
 0x160   : > { %882 = vmatprep.subr.bf16.mxu1 %v1096_v8 }
 0x162   : > { %879 = vmatmul.mubr.msk.bf16.vlgmr.msra.gmra.mxu1 %vm448_vm4, %v438_v22 }
 0x163   : > { %886 = vmatprep.mubr.msk.bf16.mxu1 %vm1097_vm2, %v1096_v8  ;;  %883 = vmatpush3.bf16.msra.mxu1 %v986_v36 }
 0x164   : > { %884 = vmatprep.subr.bf16.mxu1 %v1096_v8  ;;  %v847_v8 = vld [vmem:[%s628_s12] ss:$0 sm:$0xff] }
 0x167   : > { %885 = vmatpush3.bf16.msra.mxu1 %v987_v37 }
 0x222   : > { %v490_v24 = vpop.f32.mrf.mxu1 }
 0x223   : > { %v491_v25 = vadd.f32 %v490_v24, %v446_v23 }
 0x224   : > { %v880_v26 = vpop.f32.mrf.mxu1 }
 0x225   : > { %v1269_v27 = vadd.f32 %v491_v25, %v402_v1 }
 0x226   : > { %v493_v28 = vpop.f32.mrf.mxu1 }
 0x227   : > { %v501_v29 = vsel %vm407_vm1, %v1269_v27, 0.0 }
 0x228   : > { %502 = vadd.xlane.f32.xlu1 %v501_v29  ;;  %v881_v30 = vpop.f32.mrf.mxu1 }
 0x2b1   : > { %v503_v31 = vpop.xlane.xlu1 %502 }
 0x2b2   : > { %v504_v32 = vmul.f32 0.03125, %v503_v31 }
 0x2b4   : > { %v505_v33 = vsub.f32 %v1269_v27, %v504_v32 }
 0x2b6   : > { %v506_v34 = vmul.f32 %v505_v33, %v505_v33 }
 0x2b8   : > { %v507_v35 = vsel %vm407_vm1, %v506_v34, 0.0 }
 0x2b9   : > { %508 = vadd.xlane.f32.xlu0 %v507_v35 }
 0x342   : > { %v509_v38 = vpop.xlane.xlu0 %508 }
 0x343   : > { %v510_v39 = vmul.f32 0.03125, %v509_v38 }
 0x345   : > { %v511_v40 = vadd.f32 1e-05, %v510_v39 }
 0x347   : > { %998 = vrsqrt.f32 %v511_v40 }
 0x354   : > { %v999_v41 = vpop.eup %998 }
 0x355   : > { %v513_v43 = vmul.f32 %v999_v41, %v505_v33 }
 0x357   : > { %v520_v45 = vmul.f32 %v837_v42, %v513_v43 }
 0x359   : > { %v527_v46 = vadd.f32 %v838_v44, %v520_v45 }
 0x35b   : > { %v528_v47 = vpack.c.bf16 %v527_v46, %v527_v46 }
 0x35d   : > { %887 = vmatmul.mubr.msk.bf16.vlgmr.msra.gmra.mxu1 %vm407_vm1, %v528_v47 }
 0x41d   : > { %v593_v57 = vpop.f32.mrf.mxu1 }
 0x41e   : > { %v594_v58 = vadd.f32 %v841_v56, %v593_v57 }
 0x41f   : > { %v888_v59 = vpop.f32.mrf.mxu1 }
 0x420   : > { %v599_v60 = vmul.f32 %v594_v58, %v594_v58 }
 0x421   : > { %v596_v61 = vpop.f32.mrf.mxu1 }
 0x422   : > { %v600_v62 = vmul.f32 %v599_v60, %v594_v58 }
 0x423   : > { %v889_v63 = vpop.f32.mrf.mxu1 }
 0x424   : > { %v601_v0 = vmul.f32 0.044715, %v600_v62 }
 0x426   : > { %v602_v1 = vadd.f32 %v601_v0, %v594_v58 }
 0x428   : > { %v603_v2 = vmul.f32 0.7978846, %v602_v1 }
 0x42a   : > { %1000 = vtanh.f32 %v603_v2 }
 0x437   : > { %v1001_v3 = vpop.eup %1000 }
 0x438   : > { %v605_v4 = vadd.f32 1.0, %v1001_v3 }
 0x43a   : > { %v606_v5 = vmul.f32 0.5, %v605_v4 }
 0x43c   : > { %v607_v6 = vmul.f32 %v606_v5, %v594_v58 }
 0x43e   : > { %v608_v7 = vpack.c.bf16 %v607_v6, %v607_v6 }
 0x440   : > { %907 = vmatmul.mubr.bf16.vlgmr.msra.gmra.mxu0 %v608_v7 }
 0x500   : > { %v718_v9 = vpop.f32.mrf.mxu0 }
 0x501   : > { %v719_v10 = vadd.f32 %v847_v8, %v718_v9 }
 0x502   : > { %v908_v11 = vpop.f32.mrf.mxu0 }
 0x503   : > { %v724_v12 = vadd.f32 %v719_v10, %v1269_v27 }
 0x504   : > { %v721_v13 = vpop.f32.mrf.mxu0 }
 0x505   : > { %725 = vst.msk [vmem:[%s1237_s28] sm:$0xff] %vm407_vm1, %v724_v12 }
 0x506   : > { %v909_v14 = vpop.f32.mrf.mxu0 }
 0x507   : > { %1015 = shalt.err (!%p1012_p7)
}
 0x508   : > { %s1016_s28 = scalar_lea.hbm %s1314_s25, 128  ;;  %s1020_s13 = scalar_lea.hbm %s1381_s11, 512 }
 0x509   : > { %p1017_p8 = scmp.ne.s32.totalorder %s1314_s25, %s1016_s28  ;;  %p1021_p12 = scmp.lt.s32.totalorder %s1314_s25, %s1381_s11 }
 0x50a   : > { %p1022_p13 = scmp.lt.s32.totalorder %s1020_s13, %s1016_s28 }
 0x50b   : > { %p1018_p10 = pnand %p1017_p8, %p1209_p3 }
 0x50c   : > { %p1023_p0 = por %p1022_p13, %p1021_p12 }
 0x50d   : > { %p1019_p11 = pneg %p1018_p10 }
 0x50f   : > { %p1024_p1 = pnand %p1023_p0, %p1019_p11 }
 0x511   : > { %1027 = shalt.err (!%p1024_p1)
}
 0x512   : > { %910 = dma.vmem_to_hbm [thread:$0]  (%p1209_p3), %s1316_s15, 128, %s1314_s25, %s727_s21  }
 0x513 PF: > { %p916_p2 = scmp.ge.s32.totalorder %s1094_s24, 2  ;;  %s752_s22 = sand.u32 1, %s1066_s17  }
 0x514   : > { %s753_s27 = scalar_lea.sflag [#allocation3], %s752_s22 }
 0x515   : > { %p913_p4 = pnand %p916_p2, %p1219_p9 }
 0x517   : > { %p914_p5 = pneg %p913_p4 }
 0x519   : > { %1061 = dma.done.wait (%p914_p5), %s753_s27, 128  }
 0x51a   : > { %1063 = vsyncadd (%p914_p5), %s753_s27, 4294967168  ;;  %s24_s24 = sadd.s32 1, %s1094_s24   ;;  %s1396_s20 = sld [smem:[#allocation5_spill]] }
 0x51b   : > { %p21_p6 = scmp.ge.s32.totalorder %s24_s24, 34   ;;  %s1397_s22 = sld [smem:[#allocation6_spill]] }
 0x51c   : > { %s1398_s29 = sld [smem:[#allocation7_spill]]  ;;  %s1399_s17 = smov %s1070_s18 }
 0x51d   : > { %s1400_s18 = smov %s1074_s19  ;;  %s1401_s19 = smov %s1227_s14 }
 0x51e   : > { %s1402_s21 = smov %s1090_s23  ;;  %23 = sbr.rel (!%p21_p6) target bundleno = 7 (0x7), region = 113 }
 0x522   : > { %s1403_s23 = smov %s1398_s29 }
 0x523   :  { %758 = vsyncpa [#allocation3], 1 }
 0x524   :  { %760 = vsyncpa [#allocation3 + $0x1], 1 }

</bundles_post_ra>
